<compile_context>
chip_gen: v5e
topology: v5e:2x2
jax: 0.10.0
libtpu: 0.0.40
codegen_flags: <defaults>
</compile_context>

<pallas_src>
import jax
import jax.numpy as jnp
import numpy as np
from jax.experimental import pallas as pl
from jax.experimental.pallas import tpu as pltpu

# The "self.dtype" the ToWeightsDType module casts its output to.
WEIGHTS_DTYPE = jnp.bfloat16
LANE = 128


def _round_up(n, m):
    return ((n + m - 1) // m) * m


def _padded_dout(dout):
    """Lane padding policy for the output feature axis.

    - Multiple of 128: already lane-dense, no pad, no trailing slice.
    - <= 128: keep full-dim block (masked stores); pad+slice would cost more
      than the vst.msk penalty it avoids.
    - > 128 and ragged: pad up to the next multiple of 128.
    """
    if dout % LANE == 0 or dout <= LANE:
        return dout
    return _round_up(dout, LANE)


def _vmem_capacity_bytes():
    try:
        return int(pltpu.get_tpu_info().vmem_capacity_bytes)
    except Exception:
        return 64 << 20  # conservative default: v7x per-TensorCore VMEM


def _to_weights_dtype_mlp_kernel(x_ref, w1_ref, b1_ref, w2_ref, b2_ref, o_ref):
    """y = SiLU(x @ W1 + b1) @ W2 + b2, cast to o_ref.dtype (the weights dtype)."""
    # In-kernel downcast of the activation tile (VPU; hidden under weight DMA).
    x = x_ref[...].astype(jnp.bfloat16)

    # Linear 1: bf16 x bf16 on the MXU, f32 accumulation.
    h = jnp.dot(x, w1_ref[...], preferred_element_type=jnp.float32)
    h = h + b1_ref[...]

    # SiLU in f32: h * sigmoid(h)  (sigmoid -> EUP, mul -> VPU).
    h = h * jax.nn.sigmoid(h)

    # Linear 2: downcast activations to bf16 for the MXU, accumulate in f32.
    y = jnp.dot(h.astype(w2_ref.dtype), w2_ref[...],
                preferred_element_type=jnp.float32)
    y = y + b2_ref[...]

    # The .to(self.dtype) of ToWeightsDType happens via the output store dtype.
    o_ref[...] = y.astype(o_ref.dtype)


def prepare_to_weights_dtype_params(w1, b1, w2, b2):
    """One-time (module-init) parameter prep -- hoisted out of the forward.

    Inputs use kernel layout [in_features, out_features] (transpose PyTorch
    Linear weights once when importing them).  Produces bf16 MXU-ready
    weights, f32 [1, D] biases, with W2/b2 lane-padded only if needed.
    """
    d_in, d_h = w1.shape
    d_out = w2.shape[1]
    d_out_p = _padded_dout(d_out)

    w1_b = jnp.asarray(w1, dtype=jnp.bfloat16)
    w2_f = jnp.asarray(w2, dtype=jnp.float32)
    b1_f = jnp.asarray(b1, dtype=jnp.float32).reshape(1, d_h)
    b2_f = jnp.asarray(b2, dtype=jnp.float32).reshape(1, d_out)
    if d_out_p != d_out:
        w2_f = jnp.pad(w2_f, ((0, 0), (0, d_out_p - d_out)))
        b2_f = jnp.pad(b2_f, ((0, 0), (0, d_out_p - d_out)))
    w2_b = w2_f.astype(jnp.bfloat16)

    return {"w1": w1_b, "b1": b1_f, "w2": w2_b, "b2": b2_f, "d_out": d_out}


def to_weights_dtype_forward(x, params, *, dtype=WEIGHTS_DTYPE, tm=None):
    """Fused MLP + dtype cast.  x: [B, Din] float; returns [B, Dout] in `dtype`."""
    w1, b1, w2, b2 = params["w1"], params["b1"], params["w2"], params["b2"]
    d_out = params["d_out"]

    B, d_in = x.shape
    d_h = w1.shape[1]
    d_out_p = w2.shape[1]

    # ---- VMEM-honest tile sizing -------------------------------------------
    cap = _vmem_capacity_bytes()
    budget = int(0.70 * cap)

    # Resident weights/biases, counted double-buffered (upper bound; holds even
    # if the Buffered(1) request below is not honored).
    weight_vmem = 2 * (
        d_in * d_h * 2 + d_h * d_out_p * 2
        + 8 * _round_up(d_h, LANE) * 4
        + 8 * _round_up(d_out_p, LANE) * 4
    )
    # Per-batch-row VMEM: double-buffered f32 x tile + bf16 out tile, plus the
    # compiler-managed in-kernel intermediates (bf16 x copy, f32 h, f32 SiLU
    # result, bf16 h copy, f32 y).
    per_row = (
        2 * d_in * 4 + 2 * d_out_p * 2             # pipelined I/O tiles
        + d_in * 2 + d_h * (4 + 4 + 2) + d_out_p * 4  # in-kernel intermediates
    )
    tm_max = max((budget - weight_vmem) // per_row, 16)
    tm_max = max((tm_max // 16) * 16, 16)

    # tm rounded to 16 (bf16 sublane pack on the output tile).  We never shrink
    # tm below B just to create grid steps: grid > 1 only when VMEM forces it,
    # which is exactly when per-step activation traffic rivals the weight DMA
    # (so the v7x 2-TC split is a win, not a weight-traffic doubling).
    if tm is None:
        tm = min(_round_up(B, 16), tm_max, 1024)
    else:
        tm = min(_round_up(tm, 16), tm_max, _round_up(B, 16), 1024)

    B_p = _round_up(B, tm)
    x_p = x if B_p == B else jnp.pad(x, ((0, B_p - B), (0, 0)))
    x_p = x_p.astype(jnp.float32)   # cast to bf16 happens inside the kernel

    grid = (B_p // tm,)

    # Scoped-VMEM limit from the actual footprint, clamped per generation
    # (~72% of physical VMEM: ~46 MiB on v7x, ~92 MiB on v5e/v6e).
    footprint = weight_vmem + tm * per_row
    vmem_limit = int(min(max(footprint + (4 << 20), 16 << 20), int(0.72 * cap)))

    def _resident_spec(shape, single_buffered):
        idx = lambda i: (0,) * len(shape)
        if single_buffered:
            # Constant index_map operand: one buffer is enough.
            return pl.BlockSpec(shape, idx, pipeline_mode=pl.Buffered(1))
        return pl.BlockSpec(shape, idx)

    def _run(single_buffer_weights):
        grid_spec = pltpu.PrefetchScalarGridSpec(
            num_scalar_prefetch=0,
            grid=grid,
            in_specs=[
                pl.BlockSpec((tm, d_in), lambda i: (i, 0)),          # x row tile
                _resident_spec((d_in, d_h), single_buffer_weights),   # W1
                _resident_spec((1, d_h), single_buffer_weights),      # b1
                _resident_spec((d_h, d_out_p), single_buffer_weights),  # W2
                _resident_spec((1, d_out_p), single_buffer_weights),  # b2
            ],
            out_specs=pl.BlockSpec((tm, d_out_p), lambda i: (i, 0)),
        )
        return pl.pallas_call(
            _to_weights_dtype_mlp_kernel,
            out_shape=jax.ShapeDtypeStruct((B_p, d_out_p), dtype),
            grid_spec=grid_spec,
            compiler_params=pltpu.CompilerParams(
                dimension_semantics=("parallel",),
                vmem_limit_bytes=vmem_limit,
            ),
        )(x_p, w1, b1, w2, b2)

    try:
        out = _run(True)
    except Exception:
        # Older Pallas versions may reject pipeline_mode on a top-level
        # BlockSpec; fall back to default (double-buffered) resident operands.
        out = _run(False)

    if B_p != B or d_out_p != d_out:
        out = out[:B, :d_out]
    return out


def reference_forward(x, w1, b1, w2, b2, dtype=WEIGHTS_DTYPE):
    h = x.astype(jnp.float32) @ w1.astype(jnp.float32) + b1.astype(jnp.float32)
    h = h * jax.nn.sigmoid(h)
    y = h @ w2.astype(jnp.float32) + b2.astype(jnp.float32)
    return y.astype(dtype)


if __name__ == "__main__":
    # Small shapes consistent with the wrapped TimestepEmbedding-style MLP.
    # Config 1: tiny everything (exercises small-Dout no-pad path + batch pad).
    # Config 2: ragged Dout > 128 (exercises the lane-padding + slice path).
    configs = [
        (8, 16, 32, 32),
        (32, 16, 64, 192),
    ]

    key = jax.random.PRNGKey(0)
    for (B, Din, Dh, Dout) in configs:
        key, kx, k1, k2, k3, k4 = jax.random.split(key, 6)

        x = jax.random.normal(kx, (B, Din), dtype=jnp.float32)
        # Deterministic synthetic parameters (kernel layout: [in, out]).
        w1 = 0.02 * jax.random.normal(k1, (Din, Dh), dtype=jnp.float32)
        b1 = 0.01 * jax.random.normal(k2, (1, Dh), dtype=jnp.float32)
        w2 = 0.02 * jax.random.normal(k3, (Dh, Dout), dtype=jnp.float32)
        b2 = 0.01 * jax.random.normal(k4, (1, Dout), dtype=jnp.float32)

        # One-time parameter prep (hoisted out of the per-call wrapper).
        params = prepare_to_weights_dtype_params(w1, b1, w2, b2)

        out = jax.block_until_ready(to_weights_dtype_forward(x, params))
        ref = reference_forward(x, w1, b1, w2, b2)

        assert out.dtype == WEIGHTS_DTYPE, out.dtype
        assert out.shape == (B, Dout), out.shape
        # Compare in f32 with a tolerance appropriate for bf16 MXU inputs and
        # the bf16 output cast.
        np.testing.assert_allclose(
            np.asarray(out, dtype=np.float32),
            np.asarray(ref, dtype=np.float32),
            rtol=2e-2, atol=2e-2,
        )

    print("KERNEL_OK")
</pallas_src>

<mosaic_0001>
module attributes {stable_mosaic.version = 11 : i64} {
  func.func @_to_weights_dtype_mlp_kernel(%arg0: i32, %arg1: memref<16x16xf32, #tpu.memory_space<vmem>>, %arg2: memref<16x32xbf16, #tpu.memory_space<vmem>>, %arg3: memref<1x32xf32, #tpu.memory_space<vmem>>, %arg4: memref<32x32xbf16, #tpu.memory_space<vmem>>, %arg5: memref<1x32xf32, #tpu.memory_space<vmem>>, %arg6: memref<16x32xbf16, #tpu.memory_space<vmem>>) attributes {dimension_semantics = [#tpu.dimension_semantics<parallel>], iteration_bounds = array<i64: 1>, scalar_prefetch = 0 : i64, scratch_operands = 0 : i64, tpu.core_type = #tpu.core_type<tc>, window_params = [{transform_indices = @transform_0, window_bounds = array<i64: 16, 16>}, {pipeline_mode = #tpu.pipeline_mode<synchronous>, transform_indices = @transform_1, window_bounds = array<i64: 16, 32>}, {pipeline_mode = #tpu.pipeline_mode<synchronous>, transform_indices = @transform_2, window_bounds = array<i64: 1, 32>}, {pipeline_mode = #tpu.pipeline_mode<synchronous>, transform_indices = @transform_3, window_bounds = array<i64: 32, 32>}, {pipeline_mode = #tpu.pipeline_mode<synchronous>, transform_indices = @transform_4, window_bounds = array<i64: 1, 32>}, {transform_indices = @transform_5, window_bounds = array<i64: 16, 32>}]} {
    %c0 = arith.constant 0 : index
    %c0_0 = arith.constant 0 : index
    %0 = vector.load %arg1[%c0, %c0_0] : memref<16x16xf32, #tpu.memory_space<vmem>>, vector<16x16xf32>
    %1 = arith.truncf %0 : vector<16x16xf32> to vector<16x16xbf16>
    %c0_1 = arith.constant 0 : index
    %c0_2 = arith.constant 0 : index
    %2 = vector.load %arg2[%c0_1, %c0_2] : memref<16x32xbf16, #tpu.memory_space<vmem>>, vector<16x32xbf16>
    %cst = arith.constant dense<0.000000e+00> : vector<16x32xf32>
    %3 = tpu.matmul %1, %2, %cst {dimension_numbers = #tpu.dot_dimension_numbers<[1], [0], [0], [1], [0, 0, 1, 1], [], []>} : vector<16x16xbf16>, vector<16x32xbf16>, vector<16x32xf32> -> vector<16x32xf32>
    %c0_3 = arith.constant 0 : index
    %c0_4 = arith.constant 0 : index
    %4 = vector.load %arg3[%c0_3, %c0_4] : memref<1x32xf32, #tpu.memory_space<vmem>>, vector<1x32xf32>
    %5 = vector.broadcast %4 : vector<1x32xf32> to vector<16x32xf32>
    %6 = arith.addf %3, %5 : vector<16x32xf32>
    %7 = arith.negf %6 : vector<16x32xf32>
    %8 = math.exp %7 : vector<16x32xf32>
    %cst_5 = arith.constant 1.000000e+00 : f32
    %9 = vector.broadcast %cst_5 : f32 to vector<16x32xf32>
    %10 = arith.addf %9, %8 : vector<16x32xf32>
    %11 = arith.divf %9, %10 : vector<16x32xf32>
    %12 = arith.mulf %6, %11 : vector<16x32xf32>
    %13 = arith.truncf %12 : vector<16x32xf32> to vector<16x32xbf16>
    %c0_6 = arith.constant 0 : index
    %c0_7 = arith.constant 0 : index
    %14 = vector.load %arg4[%c0_6, %c0_7] : memref<32x32xbf16, #tpu.memory_space<vmem>>, vector<32x32xbf16>
    %cst_8 = arith.constant dense<0.000000e+00> : vector<16x32xf32>
    %15 = tpu.matmul %13, %14, %cst_8 {dimension_numbers = #tpu.dot_dimension_numbers<[1], [0], [0], [1], [0, 0, 1, 1], [], []>} : vector<16x32xbf16>, vector<32x32xbf16>, vector<16x32xf32> -> vector<16x32xf32>
    %c0_9 = arith.constant 0 : index
    %c0_10 = arith.constant 0 : index
    %16 = vector.load %arg5[%c0_9, %c0_10] : memref<1x32xf32, #tpu.memory_space<vmem>>, vector<1x32xf32>
    %17 = vector.broadcast %16 : vector<1x32xf32> to vector<16x32xf32>
    %18 = arith.addf %15, %17 : vector<16x32xf32>
    %19 = arith.truncf %18 : vector<16x32xf32> to vector<16x32xbf16>
    %c0_11 = arith.constant 0 : index
    %c0_12 = arith.constant 0 : index
    %20 = vector.load %arg6[%c0_11, %c0_12] : memref<16x32xbf16, #tpu.memory_space<vmem>>, vector<16x32xbf16>
    tpu.vector_store %arg6[%c0_11, %c0_12], %19 {strides = array<i32>} : memref<16x32xbf16, #tpu.memory_space<vmem>>, vector<16x32xbf16>,
    return
  }
  func.func @transform_0(%arg0: i32) -> (i32, i32) {
    %c0_i32 = arith.constant 0 : i32
    %c0_i32_0 = arith.constant 0 : i32
    return %arg0, %c0_i32 : i32, i32
  }
  func.func @transform_1(%arg0: i32) -> (i32, i32) {
    %c0_i32 = arith.constant 0 : i32
    %c0_i32_0 = arith.constant 0 : i32
    %c0_i32_1 = arith.constant 0 : i32
    return %c0_i32, %c0_i32_0 : i32, i32
  }
  func.func @transform_2(%arg0: i32) -> (i32, i32) {
    %c0_i32 = arith.constant 0 : i32
    %c0_i32_0 = arith.constant 0 : i32
    %c0_i32_1 = arith.constant 0 : i32
    return %c0_i32, %c0_i32_0 : i32, i32
  }
  func.func @transform_3(%arg0: i32) -> (i32, i32) {
    %c0_i32 = arith.constant 0 : i32
    %c0_i32_0 = arith.constant 0 : i32
    %c0_i32_1 = arith.constant 0 : i32
    return %c0_i32, %c0_i32_0 : i32, i32
  }
  func.func @transform_4(%arg0: i32) -> (i32, i32) {
    %c0_i32 = arith.constant 0 : i32
    %c0_i32_0 = arith.constant 0 : i32
    %c0_i32_1 = arith.constant 0 : i32
    return %c0_i32, %c0_i32_0 : i32, i32
  }
  func.func @transform_5(%arg0: i32) -> (i32, i32) {
    %c0_i32 = arith.constant 0 : i32
    %c0_i32_0 = arith.constant 0 : i32
    return %arg0, %c0_i32 : i32, i32
  }
}

module attributes {stable_mosaic.version = 11 : i64} {
  func.func @_to_weights_dtype_mlp_kernel(%arg0: i32, %arg1: memref<16x16xf32, #tpu.memory_space<vmem>>, %arg2: memref<16x32xbf16, #tpu.memory_space<vmem>>, %arg3: memref<1x32xf32, #tpu.memory_space<vmem>>, %arg4: memref<32x32xbf16, #tpu.memory_space<vmem>>, %arg5: memref<1x32xf32, #tpu.memory_space<vmem>>, %arg6: memref<16x32xbf16, #tpu.memory_space<vmem>>) attributes {dimension_semantics = [#tpu.dimension_semantics<parallel>], iteration_bounds = array<i64: 1>, scalar_prefetch = 0 : i64, scratch_operands = 0 : i64, tpu.core_type = #tpu.core_type<tc>, window_params = [{transform_indices = @transform_0, window_bounds = array<i64: 16, 16>}, {pipeline_mode = #tpu.pipeline_mode<synchronous>, transform_indices = @transform_1, window_bounds = array<i64: 16, 32>}, {pipeline_mode = #tpu.pipeline_mode<synchronous>, transform_indices = @transform_2, window_bounds = array<i64: 1, 32>}, {pipeline_mode = #tpu.pipeline_mode<synchronous>, transform_indices = @transform_3, window_bounds = array<i64: 32, 32>}, {pipeline_mode = #tpu.pipeline_mode<synchronous>, transform_indices = @transform_4, window_bounds = array<i64: 1, 32>}, {transform_indices = @transform_5, window_bounds = array<i64: 16, 32>}]} {
    %c0 = arith.constant 0 : index
    %c0_0 = arith.constant 0 : index
    %0 = vector.load %arg1[%c0, %c0_0] : memref<16x16xf32, #tpu.memory_space<vmem>>, vector<16x16xf32>
    %1 = arith.truncf %0 : vector<16x16xf32> to vector<16x16xbf16>
    %c0_1 = arith.constant 0 : index
    %c0_2 = arith.constant 0 : index
    %2 = vector.load %arg2[%c0_1, %c0_2] : memref<16x32xbf16, #tpu.memory_space<vmem>>, vector<16x32xbf16>
    %cst = arith.constant dense<0.000000e+00> : vector<16x32xf32>
    %3 = tpu.matmul %1, %2, %cst {dimension_numbers = #tpu.dot_dimension_numbers<[1], [0], [0], [1], [0, 0, 1, 1], [], []>} : vector<16x16xbf16>, vector<16x32xbf16>, vector<16x32xf32> -> vector<16x32xf32>
    %c0_3 = arith.constant 0 : index
    %c0_4 = arith.constant 0 : index
    %4 = vector.load %arg3[%c0_3, %c0_4] : memref<1x32xf32, #tpu.memory_space<vmem>>, vector<1x32xf32>
    %5 = vector.broadcast %4 : vector<1x32xf32> to vector<16x32xf32>
    %6 = arith.addf %3, %5 : vector<16x32xf32>
    %7 = arith.negf %6 : vector<16x32xf32>
    %8 = math.exp %7 : vector<16x32xf32>
    %cst_5 = arith.constant 1.000000e+00 : f32
    %9 = vector.broadcast %cst_5 : f32 to vector<16x32xf32>
    %10 = arith.addf %9, %8 : vector<16x32xf32>
    %11 = arith.divf %9, %10 : vector<16x32xf32>
    %12 = arith.mulf %6, %11 : vector<16x32xf32>
    %13 = arith.truncf %12 : vector<16x32xf32> to vector<16x32xbf16>
    %c0_6 = arith.constant 0 : index
    %c0_7 = arith.constant 0 : index
    %14 = vector.load %arg4[%c0_6, %c0_7] : memref<32x32xbf16, #tpu.memory_space<vmem>>, vector<32x32xbf16>
    %cst_8 = arith.constant dense<0.000000e+00> : vector<16x32xf32>
    %15 = tpu.matmul %13, %14, %cst_8 {dimension_numbers = #tpu.dot_dimension_numbers<[1], [0], [0], [1], [0, 0, 1, 1], [], []>} : vector<16x32xbf16>, vector<32x32xbf16>, vector<16x32xf32> -> vector<16x32xf32>
    %c0_9 = arith.constant 0 : index
    %c0_10 = arith.constant 0 : index
    %16 = vector.load %arg5[%c0_9, %c0_10] : memref<1x32xf32, #tpu.memory_space<vmem>>, vector<1x32xf32>
    %17 = vector.broadcast %16 : vector<1x32xf32> to vector<16x32xf32>
    %18 = arith.addf %15, %17 : vector<16x32xf32>
    %19 = arith.truncf %18 : vector<16x32xf32> to vector<16x32xbf16>
    %c0_11 = arith.constant 0 : index
    %c0_12 = arith.constant 0 : index
    %20 = vector.load %arg6[%c0_11, %c0_12] : memref<16x32xbf16, #tpu.memory_space<vmem>>, vector<16x32xbf16>
    tpu.vector_store %arg6[%c0_11, %c0_12], %19 {strides = array<i32>} : memref<16x32xbf16, #tpu.memory_space<vmem>>, vector<16x32xbf16>,
    return
  }
  func.func @transform_0(%arg0: i32) -> (i32, i32) {
    %c0_i32 = arith.constant 0 : i32
    %c0_i32_0 = arith.constant 0 : i32
    return %arg0, %c0_i32 : i32, i32
  }
  func.func @transform_1(%arg0: i32) -> (i32, i32) {
    %c0_i32 = arith.constant 0 : i32
    %c0_i32_0 = arith.constant 0 : i32
    %c0_i32_1 = arith.constant 0 : i32
    return %c0_i32, %c0_i32_0 : i32, i32
  }
  func.func @transform_2(%arg0: i32) -> (i32, i32) {
    %c0_i32 = arith.constant 0 : i32
    %c0_i32_0 = arith.constant 0 : i32
    %c0_i32_1 = arith.constant 0 : i32
    return %c0_i32, %c0_i32_0 : i32, i32
  }
  func.func @transform_3(%arg0: i32) -> (i32, i32) {
    %c0_i32 = arith.constant 0 : i32
    %c0_i32_0 = arith.constant 0 : i32
    %c0_i32_1 = arith.constant 0 : i32
    return %c0_i32, %c0_i32_0 : i32, i32
  }
  func.func @transform_4(%arg0: i32) -> (i32, i32) {
    %c0_i32 = arith.constant 0 : i32
    %c0_i32_0 = arith.constant 0 : i32
    %c0_i32_1 = arith.constant 0 : i32
    return %c0_i32, %c0_i32_0 : i32, i32
  }
  func.func @transform_5(%arg0: i32) -> (i32, i32) {
    %c0_i32 = arith.constant 0 : i32
    %c0_i32_0 = arith.constant 0 : i32
    return %arg0, %c0_i32 : i32, i32
  }
}

</mosaic_0001>

<bundles_post_ra>
// kernel: tpu_custom_call.1
= control target key start
LH: loop header
LB: loop body
LE: loop exit
PB: predicated region body
PF: predicated region fallthrough
CT: control target
= control target key end

     0   :  { %10 = vsyncpa [#allocation3], 0  ;;  %s410_s0 = inlined_call_operand.hbm [shape: f32[16,16], index: 0, kind: input, shape index: {}]   ;;  %s411_s1 = inlined_call_operand.hbm [shape: bf16[16,32], index: 1, kind: input, shape index: {}]   ;;  %s412_s2 = inlined_call_operand.vmem [shape: f32[1,32], index: 2, kind: input, shape index: {}]   ;;  %s413_s3 = inlined_call_operand.hbm [shape: bf16[32,32], index: 3, kind: input, shape index: {}]   ;;  %s414_s4 = inlined_call_operand.vmem [shape: f32[1,32], index: 4, kind: input, shape index: {}]   ;;  %s415_s5 = inlined_call_operand.hbm [shape: bf16[16,32], index: 5, kind: output, shape index: {}]  }
   0x1   :  { %11 = vsyncpa [#allocation6], 0  ;;  %s30_s20 = sshll.u32 %s411_s1, 4  ;;  %s31_s20 = int_to_ptr.hbm [resolvable:$true] %s30_s20 }
   0x2   :  { %12 = vsyncpa [#allocation4], 0  ;;  %s345_s21 = smov [#allocation5]   ;;  %s17_s25 = sshll.u32 %s410_s0, 4  ;;  %s18_s25 = int_to_ptr.hbm [resolvable:$true] %s17_s25 }
   0x3   :  { %s32_s22 = sshll.u32 %s345_s21, 4  ;;  %s346_s26 = smov 64   ;;  %s33_s22 = int_to_ptr.vmem [resolvable:$true] %s32_s22 }
   0x4   :  { %s347_s27 = smov 4   ;;  %s348_s28 = smov [#allocation2]  }
   0x5   :  { %38 = dma.hbm_to_vmem [thread:$0]  %s31_s20, 128, %s33_s22, [#allocation6], %s346_s26, %s346_s26, %s347_s27  }
   0x6   :  { %s19_s29 = sshll.u32 %s348_s28, 4  ;;  %s349_s1 = smov 128   ;;  %s20_s29 = int_to_ptr.vmem [resolvable:$true] %s19_s29 }
   0x7   :  { %s350_s30 = smov 8   ;;  %s45_s8 = sshll.u32 %s413_s3, 4  ;;  %s46_s8 = int_to_ptr.hbm [resolvable:$true] %s45_s8 }
   0x8   :  { %25 = dma.hbm_to_vmem [thread:$0]  %s18_s25, 256, %s20_s29, [#allocation3], %s349_s1, %s349_s1, %s350_s30  }
   0x9   :  { %s351_s9 = smov [#allocation7]  }
   0xa   :  { %s47_s0 = sshll.u32 %s351_s9, 4  ;;  %s48_s0 = int_to_ptr.vmem [resolvable:$true] %s47_s0 }
   0xb   :  { %53 = dma.hbm_to_vmem [thread:$0]  %s46_s8, 256, %s48_s0, [#allocation6], %s346_s26, %s346_s26, %s347_s27  }
   0xc   :  { %339 = dma.done.wait [#allocation3], 256  }
   0xd   :  { %340 = vsyncadd [#allocation3], 4294967040 }
   0xe   :  { %341 = dma.done.wait [#allocation6], 384  }
   0xf   :  { %342 = vsyncadd [#allocation6], 4294966912  ;;  %v222_v0 = vld [vmem:[#allocation5] sm:$0xff]  ;;  %v69_v1 = vld [vmem:[#allocation2] sm:$0xff]  ;;  %vm84_vm0 = vcmask 130048   ;;  %vm163_vm9 = vcmask 261120  }
  0x10   :  { %v70_v2 = vld [vmem:[#allocation2 + $0x8] sm:$0xff]  ;;  %95 = vmatpush.bf16.msra.mxu0 %v222_v0  ;;  %v233_v4 = vld [vmem:[%s412_s2] ss:$0 sm:$0xff]  ;;  %v223_v9 = vld [vmem:[#allocation7] sm:$0xff]  ;;  %vm183_vm10 = vcmask 257024   ;;  %s352_s12 = smov [#allocation8]  }
  0x11   :  { %v71_v3 = vpack.c.bf16 %v70_v2, %v69_v1  ;;  %v224_v7 = vld [vmem:[#allocation7 + $0x8] sm:$0xff]  ;;  %s190_s13 = sshll.u32 %s352_s12, 4  ;;  %s192_s16 = sshll.u32 %s415_s5, 4  ;;  %s191_s13 = int_to_ptr.vmem [resolvable:$true] %s190_s13  ;;  %s193_s16 = int_to_ptr.hbm [resolvable:$true] %s192_s16 }
  0x12   :  { %173 = vmatpush.bf16.msra.mxu1 %v224_v7  ;;  %v234_v40 = vld [vmem:[%s414_s4] ss:$0 sm:$0xff] }
  0x13   :  { %210 = vmatmul.msk.bf16.vlgmr.msra.gmra.mxu0 %vm84_vm0, %v71_v3 }
  0x16   :  { %174 = vmatpush.bf16.msra.mxu1 %v223_v9 }
  0x90   :  { %v97_v5 = vpop.f32.mrf.mxu0 }
  0x91   :  { %v98_v6 = vadd.f32 %v233_v4, %v97_v5 }
  0x93   :  { %v211_v8 = vmul.f32 -1.442695, %v98_v6 }
  0x95   :  { %235 = vpow2.f32 %v211_v8 }
  0x98   :  { %v99_v10 = vpop.f32.mrf.mxu0 }
  0x99   :  { %v100_v11 = vadd.f32 %v233_v4, %v99_v10 }
  0x9b   :  { %v236_v12 = vpop.eup %235  ;;  %v212_v13 = vmul.f32 -1.442695, %v100_v11 }
  0x9c   :  { %v108_v14 = vadd.f32 1.0, %v236_v12 }
  0x9d   :  { %237 = vpow2.f32 %v212_v13 }
  0x9e   :  { %239 = vrcp.f32 %v108_v14  ;;  %v121_v24 = vand.u32 2147483648, %v108_v14  ;;  %vm115_vm2 = vweird.f32 %v108_v14  ;;  %v119_v25 = vand.u32 2147483647, %v108_v14 }
  0xa0   :  { %v122_v31 = vor.u32 1.1754944e-38, %v121_v24  ;;  %vm120_vm5 = vcmp.eq.f32.partialorder %v119_v25, 8.507059e+37 }
  0xa3   :  { %v238_v15 = vpop.eup %237 }
  0xa4   :  { %v240_v16 = vpop.eup %239  ;;  %v109_v17 = vadd.f32 1.0, %v238_v15 }
  0xa5   :  { %v111_v18 = vmul.f32 %v240_v16, %v108_v14  ;;  %vm116_vm1 = vweird.f32 %v240_v16 }
  0xa6   :  { %241 = vrcp.f32 %v109_v17  ;;  %vm117_vm3 = vmor %vm115_vm2, %vm116_vm1  ;;  %v136_v27 = vand.u32 2147483648, %v109_v17  ;;  %v134_v30 = vand.u32 2147483647, %v109_v17  ;;  %vm130_vm6 = vweird.f32 %v109_v17 }
  0xa7   :  { %v112_v19 = vsub.f32 1.0, %v111_v18 }
  0xa8   :  { %v137_v34 = vor.u32 1.1754944e-38, %v136_v27  ;;  %vm135_vm8 = vcmp.eq.f32.partialorder %v134_v30, 8.507059e+37 }
  0xa9   :  { %v113_v20 = vmul.f32 %v240_v16, %v112_v19 }
  0xab   :  { %v114_v22 = vadd.f32 %v240_v16, %v113_v20 }
  0xac   :  { %v242_v21 = vpop.eup %241 }
  0xad   :  { %v126_v23 = vmul.f32 %v242_v21, %v109_v17  ;;  %v118_v28 = vsel %vm117_vm3, %v240_v16, %v114_v22  ;;  %vm131_vm4 = vweird.f32 %v242_v21 }
  0xae   :  { %v123_v33 = vsel %vm120_vm5, %v122_v31, %v118_v28  ;;  %vm132_vm7 = vmor %vm130_vm6, %vm131_vm4 }
  0xaf   :  { %v127_v26 = vsub.f32 1.0, %v126_v23  ;;  %v140_v37 = vmul.f32 %v123_v33, %v98_v6 }
  0xb1   :  { %v128_v29 = vmul.f32 %v242_v21, %v127_v26 }
  0xb3   :  { %v129_v32 = vadd.f32 %v242_v21, %v128_v29 }
  0xb5   :  { %v133_v35 = vsel %vm132_vm7, %v242_v21, %v129_v32 }
  0xb6   :  { %v138_v36 = vsel %vm135_vm8, %v137_v34, %v133_v35 }
  0xb7   :  { %v141_v38 = vmul.f32 %v138_v36, %v100_v11 }
  0xb9   :  { %v142_v39 = vpack.c.bf16 %v141_v38, %v140_v37 }
  0xbb   :  { %221 = vmatmul.msk.bf16.vlgmr.msra.gmra.mxu1 %vm163_vm9, %v142_v39 }
 0x138   :  { %v176_v41 = vpop.f32.mrf.mxu1 }
 0x139   :  { %v177_v42 = vadd.f32 %v234_v40, %v176_v41 }
 0x13b   :  { %v181_v43 = vpack.c.bf16 %v177_v42, %v177_v42 }
 0x13d   :  { %184 = vst.msk [vmem:[#allocation8] sm:$0xf] %vm183_vm10, %v181_v43 }
 0x140   :  { %v178_v44 = vpop.f32.mrf.mxu1 }
 0x141   :  { %v179_v45 = vadd.f32 %v234_v40, %v178_v44 }
 0x143   :  { %v182_v46 = vpack.c.bf16 %v179_v45, %v179_v45 }
 0x145   :  { %185 = vst.msk [vmem:[#allocation8 + $0x4] sm:$0xf] %vm183_vm10, %v182_v46 }
 0x146   :  { %198 = dma.vmem_to_hbm [thread:$0]  %s191_s13, 128, %s193_s16, [#allocation4], %s346_s26, %s346_s26, %s347_s27  }
 0x147   :  { %343 = dma.done.wait [#allocation4], 128  }
 0x148   :  { %344 = vsyncadd [#allocation4], 4294967168 }
 0x149   :  { %203 = vsyncpa [#allocation3], 1 }
 0x14a   :  { %204 = vsyncpa [#allocation6], 1 }
 0x14b   :  { %205 = vsyncpa [#allocation4], 1 }

// kernel: tpu_custom_call.1
= control target key start
LH: loop header
LB: loop body
LE: loop exit
PB: predicated region body
PF: predicated region fallthrough
CT: control target
= control target key end

     0   :  { %10 = vsyncpa [#allocation3], 0  ;;  %s410_s0 = inlined_call_operand.hbm [shape: f32[16,16], index: 0, kind: input, shape index: {}]   ;;  %s411_s1 = inlined_call_operand.hbm [shape: bf16[16,32], index: 1, kind: input, shape index: {}]   ;;  %s412_s2 = inlined_call_operand.vmem [shape: f32[1,32], index: 2, kind: input, shape index: {}]   ;;  %s413_s3 = inlined_call_operand.hbm [shape: bf16[32,32], index: 3, kind: input, shape index: {}]   ;;  %s414_s4 = inlined_call_operand.vmem [shape: f32[1,32], index: 4, kind: input, shape index: {}]   ;;  %s415_s5 = inlined_call_operand.hbm [shape: bf16[16,32], index: 5, kind: output, shape index: {}]  }
   0x1   :  { %11 = vsyncpa [#allocation6], 0  ;;  %s30_s20 = sshll.u32 %s411_s1, 4  ;;  %s31_s20 = int_to_ptr.hbm [resolvable:$true] %s30_s20 }
   0x2   :  { %12 = vsyncpa [#allocation4], 0  ;;  %s345_s21 = smov [#allocation5]   ;;  %s17_s25 = sshll.u32 %s410_s0, 4  ;;  %s18_s25 = int_to_ptr.hbm [resolvable:$true] %s17_s25 }
   0x3   :  { %s32_s22 = sshll.u32 %s345_s21, 4  ;;  %s346_s26 = smov 64   ;;  %s33_s22 = int_to_ptr.vmem [resolvable:$true] %s32_s22 }
   0x4   :  { %s347_s27 = smov 4   ;;  %s348_s28 = smov [#allocation2]  }
   0x5   :  { %38 = dma.hbm_to_vmem [thread:$0]  %s31_s20, 128, %s33_s22, [#allocation6], %s346_s26, %s346_s26, %s347_s27  }
   0x6   :  { %s19_s29 = sshll.u32 %s348_s28, 4  ;;  %s349_s1 = smov 128   ;;  %s20_s29 = int_to_ptr.vmem [resolvable:$true] %s19_s29 }
   0x7   :  { %s350_s30 = smov 8   ;;  %s45_s8 = sshll.u32 %s413_s3, 4  ;;  %s46_s8 = int_to_ptr.hbm [resolvable:$true] %s45_s8 }
   0x8   :  { %25 = dma.hbm_to_vmem [thread:$0]  %s18_s25, 256, %s20_s29, [#allocation3], %s349_s1, %s349_s1, %s350_s30  }
   0x9   :  { %s351_s9 = smov [#allocation7]  }
   0xa   :  { %s47_s0 = sshll.u32 %s351_s9, 4  ;;  %s48_s0 = int_to_ptr.vmem [resolvable:$true] %s47_s0 }
   0xb   :  { %53 = dma.hbm_to_vmem [thread:$0]  %s46_s8, 256, %s48_s0, [#allocation6], %s346_s26, %s346_s26, %s347_s27  }
   0xc   :  { %339 = dma.done.wait [#allocation3], 256  }
   0xd   :  { %340 = vsyncadd [#allocation3], 4294967040 }
   0xe   :  { %341 = dma.done.wait [#allocation6], 384  }
   0xf   :  { %342 = vsyncadd [#allocation6], 4294966912  ;;  %v222_v0 = vld [vmem:[#allocation5] sm:$0xff]  ;;  %v69_v1 = vld [vmem:[#allocation2] sm:$0xff]  ;;  %vm84_vm0 = vcmask 130048   ;;  %vm163_vm9 = vcmask 261120  }
  0x10   :  { %v70_v2 = vld [vmem:[#allocation2 + $0x8] sm:$0xff]  ;;  %95 = vmatpush.bf16.msra.mxu0 %v222_v0  ;;  %v233_v4 = vld [vmem:[%s412_s2] ss:$0 sm:$0xff]  ;;  %v223_v9 = vld [vmem:[#allocation7] sm:$0xff]  ;;  %vm183_vm10 = vcmask 257024   ;;  %s352_s12 = smov [#allocation8]  }
  0x11   :  { %v71_v3 = vpack.c.bf16 %v70_v2, %v69_v1  ;;  %v224_v7 = vld [vmem:[#allocation7 + $0x8] sm:$0xff]  ;;  %s190_s13 = sshll.u32 %s352_s12, 4  ;;  %s192_s16 = sshll.u32 %s415_s5, 4  ;;  %s191_s13 = int_to_ptr.vmem [resolvable:$true] %s190_s13  ;;  %s193_s16 = int_to_ptr.hbm [resolvable:$true] %s192_s16 }
  0x12   :  { %173 = vmatpush.bf16.msra.mxu1 %v224_v7  ;;  %v234_v40 = vld [vmem:[%s414_s4] ss:$0 sm:$0xff] }
  0x13   :  { %210 = vmatmul.msk.bf16.vlgmr.msra.gmra.mxu0 %vm84_vm0, %v71_v3 }
  0x16   :  { %174 = vmatpush.bf16.msra.mxu1 %v223_v9 }
  0x90   :  { %v97_v5 = vpop.f32.mrf.mxu0 }
  0x91   :  { %v98_v6 = vadd.f32 %v233_v4, %v97_v5 }
  0x93   :  { %v211_v8 = vmul.f32 -1.442695, %v98_v6 }
  0x95   :  { %235 = vpow2.f32 %v211_v8 }
  0x98   :  { %v99_v10 = vpop.f32.mrf.mxu0 }
  0x99   :  { %v100_v11 = vadd.f32 %v233_v4, %v99_v10 }
  0x9b   :  { %v236_v12 = vpop.eup %235  ;;  %v212_v13 = vmul.f32 -1.442695, %v100_v11 }
  0x9c   :  { %v108_v14 = vadd.f32 1.0, %v236_v12 }
  0x9d   :  { %237 = vpow2.f32 %v212_v13 }
  0x9e   :  { %239 = vrcp.f32 %v108_v14  ;;  %v121_v24 = vand.u32 2147483648, %v108_v14  ;;  %vm115_vm2 = vweird.f32 %v108_v14  ;;  %v119_v25 = vand.u32 2147483647, %v108_v14 }
  0xa0   :  { %v122_v31 = vor.u32 1.1754944e-38, %v121_v24  ;;  %vm120_vm5 = vcmp.eq.f32.partialorder %v119_v25, 8.507059e+37 }
  0xa3   :  { %v238_v15 = vpop.eup %237 }
  0xa4   :  { %v240_v16 = vpop.eup %239  ;;  %v109_v17 = vadd.f32 1.0, %v238_v15 }
  0xa5   :  { %v111_v18 = vmul.f32 %v240_v16, %v108_v14  ;;  %vm116_vm1 = vweird.f32 %v240_v16 }
  0xa6   :  { %241 = vrcp.f32 %v109_v17  ;;  %vm117_vm3 = vmor %vm115_vm2, %vm116_vm1  ;;  %v136_v27 = vand.u32 2147483648, %v109_v17  ;;  %v134_v30 = vand.u32 2147483647, %v109_v17  ;;  %vm130_vm6 = vweird.f32 %v109_v17 }
  0xa7   :  { %v112_v19 = vsub.f32 1.0, %v111_v18 }
  0xa8   :  { %v137_v34 = vor.u32 1.1754944e-38, %v136_v27  ;;  %vm135_vm8 = vcmp.eq.f32.partialorder %v134_v30, 8.507059e+37 }
  0xa9   :  { %v113_v20 = vmul.f32 %v240_v16, %v112_v19 }
  0xab   :  { %v114_v22 = vadd.f32 %v240_v16, %v113_v20 }
  0xac   :  { %v242_v21 = vpop.eup %241 }
  0xad   :  { %v126_v23 = vmul.f32 %v242_v21, %v109_v17  ;;  %v118_v28 = vsel %vm117_vm3, %v240_v16, %v114_v22  ;;  %vm131_vm4 = vweird.f32 %v242_v21 }
  0xae   :  { %v123_v33 = vsel %vm120_vm5, %v122_v31, %v118_v28  ;;  %vm132_vm7 = vmor %vm130_vm6, %vm131_vm4 }
  0xaf   :  { %v127_v26 = vsub.f32 1.0, %v126_v23  ;;  %v140_v37 = vmul.f32 %v123_v33, %v98_v6 }
  0xb1   :  { %v128_v29 = vmul.f32 %v242_v21, %v127_v26 }
  0xb3   :  { %v129_v32 = vadd.f32 %v242_v21, %v128_v29 }
  0xb5   :  { %v133_v35 = vsel %vm132_vm7, %v242_v21, %v129_v32 }
  0xb6   :  { %v138_v36 = vsel %vm135_vm8, %v137_v34, %v133_v35 }
  0xb7   :  { %v141_v38 = vmul.f32 %v138_v36, %v100_v11 }
  0xb9   :  { %v142_v39 = vpack.c.bf16 %v141_v38, %v140_v37 }
  0xbb   :  { %221 = vmatmul.msk.bf16.vlgmr.msra.gmra.mxu1 %vm163_vm9, %v142_v39 }
 0x138   :  { %v176_v41 = vpop.f32.mrf.mxu1 }
 0x139   :  { %v177_v42 = vadd.f32 %v234_v40, %v176_v41 }
 0x13b   :  { %v181_v43 = vpack.c.bf16 %v177_v42, %v177_v42 }
 0x13d   :  { %184 = vst.msk [vmem:[#allocation8] sm:$0xf] %vm183_vm10, %v181_v43 }
 0x140   :  { %v178_v44 = vpop.f32.mrf.mxu1 }
 0x141   :  { %v179_v45 = vadd.f32 %v234_v40, %v178_v44 }
 0x143   :  { %v182_v46 = vpack.c.bf16 %v179_v45, %v179_v45 }
 0x145   :  { %185 = vst.msk [vmem:[#allocation8 + $0x4] sm:$0xf] %vm183_vm10, %v182_v46 }
 0x146   :  { %198 = dma.vmem_to_hbm [thread:$0]  %s191_s13, 128, %s193_s16, [#allocation4], %s346_s26, %s346_s26, %s347_s27  }
 0x147   :  { %343 = dma.done.wait [#allocation4], 128  }
 0x148   :  { %344 = vsyncadd [#allocation4], 4294967168 }
 0x149   :  { %203 = vsyncpa [#allocation3], 1 }
 0x14a   :  { %204 = vsyncpa [#allocation6], 1 }
 0x14b   :  { %205 = vsyncpa [#allocation4], 1 }

</bundles_post_ra>
